<compile_context>
chip_gen: v6e
topology: v6e:2x2x1
jax: 0.10.0
libtpu: 0.0.40
codegen_flags: <defaults>
</compile_context>

<pallas_src>
import functools
import math

import numpy as np
import jax
import jax.numpy as jnp
from jax import lax
from jax.experimental import pallas as pl
from jax.experimental.pallas import tpu as pltpu


# ----------------------------------------------------------------------------
# Small helpers
# ----------------------------------------------------------------------------
def _round_up(x, m):
    return ((x + m - 1) // m) * m


def _pick_tile(dim, preferred, align):
    """Largest tile <= preferred that divides `dim` and is a multiple of
    `align`; falls back to the full dimension (always a legal block shape)."""
    if dim <= preferred:
        return dim
    t = (preferred // align) * align
    while t >= align:
        if dim % t == 0:
            return t
        t -= align
    return dim


def _vmem_budget_bytes():
    """75% of physical VMEM (leaves headroom for compiler scratch; v7x-safe)."""
    try:
        cap = int(pltpu.get_tpu_info().vmem_capacity_bytes)
    except Exception:
        cap = 64 * 1024 * 1024          # conservative default (v7x per-core)
    return cap * 3 // 4


def _is_v5e():
    try:
        return "v5" in jax.devices()[0].device_kind.lower()
    except Exception:
        return False


_STRIDED_ROLL_OK = None


def _strided_roll_ok():
    """One-shot probe: does pltpu.roll(x, s, axis=1, stride=1, stride_axis=0)
    rotate row i by (s + i) with jnp.roll semantics on this backend?"""
    global _STRIDED_ROLL_OK
    if _STRIDED_ROLL_OK is None:
        def _probe(x_ref, o_ref):
            o_ref[...] = pltpu.roll(x_ref[...], 248, axis=1,
                                    stride=1, stride_axis=0)
        try:
            x = jnp.arange(8 * 256, dtype=jnp.float32).reshape(8, 256)
            out = pl.pallas_call(
                _probe,
                out_shape=jax.ShapeDtypeStruct((8, 256), jnp.float32),
            )(x)
            out = np.asarray(jax.block_until_ready(out))
            xin = np.asarray(x)
            exp = np.stack([np.roll(xin[i], 248 + i) for i in range(8)])
            _STRIDED_ROLL_OK = bool(np.array_equal(out, exp))
        except Exception:
            _STRIDED_ROLL_OK = False
    return _STRIDED_ROLL_OK


# ----------------------------------------------------------------------------
# Tiled linear (matmul + bias) kernel
# ----------------------------------------------------------------------------
def _linear_kernel(x_ref, w_ref, b_ref, o_ref, acc_ref, *, n_k):
    @pl.when(pl.program_id(2) == 0)
    def _init():
        acc_ref[...] = jnp.zeros_like(acc_ref)

    # bf16 MXU operands (weights already stored bf16), f32 accumulation.
    acc_ref[...] += jnp.dot(x_ref[...].astype(jnp.bfloat16), w_ref[...],
                            preferred_element_type=jnp.float32)

    @pl.when(pl.program_id(2) == n_k - 1)
    def _finalize():
        o_ref[...] = (acc_ref[...] + b_ref[...]).astype(o_ref.dtype)


def pallas_linear(x2d, w, b):
    """y = x2d @ w + b for x2d:[M, K] f32, w:[K, N] bf16, b:[N] f32."""
    M, K = x2d.shape
    N = w.shape[1]
    Mp = _round_up(M, 8)
    if Mp != M:
        x2d = jnp.pad(x2d, ((0, Mp - M), (0, 0)))
    tm = _pick_tile(Mp, 512, 8)        # big tiles: fewer W re-streams from HBM
    tn = _pick_tile(N, 512, 128)       # lane-dense output tiles
    tk = _pick_tile(K, 512, 128)
    nm, nn, nk = Mp // tm, N // tn, K // tk
    kernel = functools.partial(_linear_kernel, n_k=nk)
    y = pl.pallas_call(
        kernel,
        out_shape=jax.ShapeDtypeStruct((Mp, N), x2d.dtype),
        grid_spec=pltpu.PrefetchScalarGridSpec(
            num_scalar_prefetch=0,
            grid=(nm, nn, nk),
            in_specs=[
                pl.BlockSpec((tm, tk), lambda i, j, k: (i, k)),
                pl.BlockSpec((tk, tn), lambda i, j, k: (k, j)),
                pl.BlockSpec((1, tn), lambda i, j, k: (0, j)),
            ],
            out_specs=pl.BlockSpec((tm, tn), lambda i, j, k: (i, j)),
            scratch_shapes=[pltpu.VMEM((tm, tn), jnp.float32)],
        ),
        compiler_params=pltpu.CompilerParams(
            dimension_semantics=("parallel", "parallel", "arbitrary"),
            vmem_limit_bytes=_vmem_budget_bytes(),
        ),
    )(x2d, w, b.reshape(1, N))
    return y if Mp == M else y[:M]


# ----------------------------------------------------------------------------
# Attention kernel: one (batch, head, q-tile) block per grid step
# ----------------------------------------------------------------------------
def _attention_kernel(q_ref, k_ref, v_ref, rel_ref, o_ref, attn_ref=None, *,
                      scale, use_xl_bias, w_pad, approx_recip):
    q = q_ref[0, 0]                        # (tq, hd) f32, unscaled
    k = k_ref[0, 0]                        # (Sk, hd)
    v = v_ref[0, 0]                        # (Sk, hd)
    tq = q.shape[0]
    sk = k.shape[0]

    qb = q.astype(jnp.bfloat16)

    # QK^T on the MXU (contract last dims, no transpose); scale applied to the
    # small (tq, Sk) result instead of rescaling the resident K block.
    scores = lax.dot_general(
        qb, k.astype(jnp.bfloat16), (((1,), (1,)), ((), ())),
        preferred_element_type=jnp.float32) * scale

    if use_xl_bias:
        # Transformer-XL-style bias:
        #   bias[i, k] = q_i . T_pad[s0 + k + tq - i]
        # One MXU matmul against the per-tile window of the clamped relative
        # table, then a per-row rotate (XLU) + static slice does the skew.
        qi = pl.program_id(2)
        nq = pl.num_programs(2)
        s0 = pl.multiple_of((nq - 1 - qi) * tq, 8)
        t_win = rel_ref[pl.ds(s0, w_pad), :]                  # (w_pad, hd) f32
        m_rel = lax.dot_general(
            qb, t_win.astype(jnp.bfloat16), (((1,), (1,)), ((), ())),
            preferred_element_type=jnp.float32)               # (tq, w_pad)
        rolled = pltpu.roll(m_rel, w_pad - tq, axis=1,
                            stride=1, stride_axis=0)          # row i by w_pad-tq+i
        bias = rolled[:, :sk]
    else:
        bias = rel_ref[0, 0]                                  # (tq, Sk) precomputed

    scores = scores + bias

    # Numerically-stable softmax in f32.
    m = jnp.max(scores, axis=-1, keepdims=True)
    e = jnp.exp(scores - m)
    denom = jnp.sum(e, axis=-1, keepdims=True)
    p = e * pl.reciprocal(denom, approx=approx_recip)

    out = jnp.dot(p.astype(jnp.bfloat16), v.astype(jnp.bfloat16),
                  preferred_element_type=jnp.float32)
    o_ref[0, 0] = out.astype(o_ref.dtype)
    if attn_ref is not None:
        attn_ref[0, 0] = p.astype(attn_ref.dtype)


def pallas_attention(q_h, k_h, v_h, rel_table, max_rel, *, scale,
                     return_attention, q_tile=None):
    """q_h/k_h/v_h: [B, H, S, hd]; rel_table: [2R+1, hd]."""
    B, H, Sq, hd = q_h.shape
    Sk = k_h.shape[2]

    use_xl = _strided_roll_ok()

    # q-tile size: target MXU fill, bounded by an actual VMEM estimate.
    budget = _vmem_budget_bytes()
    tq_target = 128 if _is_v5e() else 256
    fixed = 4 * 4 * Sk * hd + 2 * 4 * hd * (Sq + Sk + 256)   # K/V + rel table
    per_row = 4 * 8 * (Sk + 256)                             # f32 temporaries
    if return_attention:
        per_row += 2 * 4 * Sk                                # attn out block
    tq_cap = max(8, int((budget - fixed) // max(per_row, 1)) // 8 * 8)
    if q_tile is not None:
        assert Sq % q_tile == 0
        tq = q_tile
    else:
        tq = _pick_tile(Sq, max(8, min(tq_target, tq_cap)), 8)
    nq = Sq // tq

    if use_xl:
        # Clamped relative table over the full offset range [-(Sq-1), Sk-1]
        # (row 1+r <-> offset r-(Sq-1); row 0 is a dummy pad).  O(S*hd) HBM.
        w_pad = _round_up(tq + Sk, 128)
        r = jnp.arange(Sq + Sk - 1)
        idx = jnp.clip(r - (Sq - 1), -max_rel, max_rel) + max_rel
        t_full = rel_table[idx].astype(jnp.float32)           # (Sq+Sk-1, hd)
        tail = max(0, (Sq - tq) + w_pad - (1 + Sq + Sk - 1))
        rel_in = jnp.pad(t_full, ((1, tail), (0, 0)))
        rel_spec = pl.BlockSpec(rel_in.shape, lambda b, h, qi: (0, 0))
    else:
        # Fallback (strided roll unavailable on this backend): compute the
        # full bias with XLA in the wrapper and stream it per q-tile.
        w_pad = 0
        q_pos = jnp.arange(Sq)[:, None]
        k_pos = jnp.arange(Sk)[None, :]
        idx = jnp.clip(k_pos - q_pos, -max_rel, max_rel) + max_rel
        rel_logits = jnp.einsum("bhqd,rd->bhqr", q_h, rel_table)
        rel_in = jnp.take_along_axis(
            rel_logits,
            jnp.broadcast_to(idx[None, None], (B, H, Sq, Sk)),
            axis=-1).astype(jnp.float32)                      # (B,H,Sq,Sk)
        rel_spec = pl.BlockSpec((1, 1, tq, Sk), lambda b, h, qi: (b, h, qi, 0))

    kernel = functools.partial(_attention_kernel, scale=scale,
                               use_xl_bias=use_xl, w_pad=w_pad,
                               approx_recip=not return_attention)

    o_sds = jax.ShapeDtypeStruct((B, H, Sq, hd), q_h.dtype)
    o_spec = pl.BlockSpec((1, 1, tq, hd), lambda b, h, qi: (b, h, qi, 0))
    if return_attention:
        out_shape = (o_sds, jax.ShapeDtypeStruct((B, H, Sq, Sk), jnp.float32))
        out_specs = (o_spec,
                     pl.BlockSpec((1, 1, tq, Sk), lambda b, h, qi: (b, h, qi, 0)))
    else:
        out_shape = o_sds
        out_specs = o_spec

    result = pl.pallas_call(
        kernel,
        out_shape=out_shape,
        grid_spec=pltpu.PrefetchScalarGridSpec(
            num_scalar_prefetch=0,
            # q-tile axis innermost: K/V block indices are constant in qi, so
            # K and V stay VMEM-resident across the q loop of each head.
            grid=(B, H, nq),
            in_specs=[
                pl.BlockSpec((1, 1, tq, hd), lambda b, h, qi: (b, h, qi, 0)),
                pl.BlockSpec((1, 1, Sk, hd), lambda b, h, qi: (b, h, 0, 0)),
                pl.BlockSpec((1, 1, Sk, hd), lambda b, h, qi: (b, h, 0, 0)),
                rel_spec,
            ],
            out_specs=out_specs,
        ),
        compiler_params=pltpu.CompilerParams(
            dimension_semantics=("parallel", "parallel", "arbitrary"),
            vmem_limit_bytes=budget,
        ),
    )(q_h, k_h, v_h, rel_in)

    if return_attention:
        return result[0], result[1]
    return result, None


# ----------------------------------------------------------------------------
# Module wrapper
# ----------------------------------------------------------------------------
class LongRangeTemporalAttentionPallas:
    def __init__(self, d_model, n_heads=8, max_relative_position=32, key=None):
        assert d_model % n_heads == 0
        self.d_model = d_model
        self.n_heads = n_heads
        self.head_dim = d_model // n_heads
        self.max_relative_position = max_relative_position

        if key is None:
            key = jax.random.PRNGKey(0)
        ks = jax.random.split(key, 9)
        lim = 1.0 / math.sqrt(d_model)

        def u(k, shape, scale):
            return jax.random.uniform(k, shape, jnp.float32, -scale, scale)

        # f32 master weights, stored [in, out]  (y = x @ W + b).
        self.Wq, self.bq = u(ks[0], (d_model, d_model), lim), u(ks[1], (d_model,), lim)
        self.Wk, self.bk = u(ks[2], (d_model, d_model), lim), u(ks[3], (d_model,), lim)
        self.Wv, self.bv = u(ks[4], (d_model, d_model), lim), u(ks[5], (d_model,), lim)
        self.Wo, self.bo = u(ks[6], (d_model, d_model), lim), u(ks[7], (d_model,), lim)
        # xavier_uniform for the relative-position table
        fan = (2 * max_relative_position + 1) + self.head_dim
        xlim = math.sqrt(6.0 / fan)
        self.rel_pos_encoding = u(ks[8], (2 * max_relative_position + 1,
                                          self.head_dim), xlim)

        # Kernel-side weights: bf16 in HBM (halves weight streaming on the
        # mem-bound projections; accumulation stays f32).  Q/K/V fused so the
        # activation is streamed from HBM once for self-attention.
        bf = jnp.bfloat16
        self.Wq_bf, self.Wk_bf = self.Wq.astype(bf), self.Wk.astype(bf)
        self.Wv_bf, self.Wo_bf = self.Wv.astype(bf), self.Wo.astype(bf)
        self.W_qkv = jnp.concatenate([self.Wq, self.Wk, self.Wv], 1).astype(bf)
        self.b_qkv = jnp.concatenate([self.bq, self.bk, self.bv], 0)
        self.W_kv = jnp.concatenate([self.Wk, self.Wv], 1).astype(bf)
        self.b_kv = jnp.concatenate([self.bk, self.bv], 0)

        # Probe the strided-roll support once, eagerly (outside any jit).
        _strided_roll_ok()

    # --- projections ---------------------------------------------------------
    def _proj(self, x, w, b):
        B, S, Din = x.shape
        y = pallas_linear(x.reshape(B * S, Din), w, b)
        return y.reshape(B, S, -1)

    def _project_qkv(self, query, key, value):
        D = self.d_model
        if query is key and key is value:            # self-attention: fused QKV
            qkv = self._proj(query, self.W_qkv, self.b_qkv)
            return qkv[..., :D], qkv[..., D:2 * D], qkv[..., 2 * D:]
        if key is value:                             # shared K/V source: fused KV
            q = self._proj(query, self.Wq_bf, self.bq)
            kv = self._proj(key, self.W_kv, self.b_kv)
            return q, kv[..., :D], kv[..., D:]
        return (self._proj(query, self.Wq_bf, self.bq),
                self._proj(key, self.Wk_bf, self.bk),
                self._proj(value, self.Wv_bf, self.bv))

    # --- forward -------------------------------------------------------------
    def __call__(self, query, key, value, mask=None, return_attention=True,
                 q_tile=None):
        assert mask is None, "TODO(synk): attention mask not implemented"
        B, Sq, D = query.shape
        Sk = key.shape[1]
        H, hd = self.n_heads, self.head_dim

        q, k, v = self._project_qkv(query, key, value)

        # split heads: [B, S, D] -> [B, H, S, hd]
        def heads(x, S):
            return x.reshape(B, S, H, hd).transpose(0, 2, 1, 3)

        q_h, k_h, v_h = heads(q, Sq), heads(k, Sk), heads(v, Sk)

        out_h, attn = pallas_attention(
            q_h, k_h, v_h, self.rel_pos_encoding, self.max_relative_position,
            scale=1.0 / math.sqrt(hd), return_attention=return_attention,
            q_tile=q_tile)

        # merge heads + output projection
        out = out_h.transpose(0, 2, 1, 3).reshape(B, Sq, D)
        out = self._proj(out, self.Wo_bf, self.bo)
        return out, attn

    # --- pure-JAX reference for validation -----------------------------------
    def reference(self, query, key, value):
        B, Sq, D = query.shape
        Sk = key.shape[1]
        H, hd = self.n_heads, self.head_dim
        q = query @ self.Wq + self.bq
        k = key @ self.Wk + self.bk
        v = value @ self.Wv + self.bv
        q = q.reshape(B, Sq, H, hd).transpose(0, 2, 1, 3)
        k = k.reshape(B, Sk, H, hd).transpose(0, 2, 1, 3)
        v = v.reshape(B, Sk, H, hd).transpose(0, 2, 1, 3)
        scores = jnp.einsum("bhqd,bhkd->bhqk", q, k) / math.sqrt(hd)
        q_pos = jnp.arange(Sq)[:, None]
        k_pos = jnp.arange(Sk)[None, :]
        rel_idx = jnp.clip(k_pos - q_pos, -self.max_relative_position,
                           self.max_relative_position) + self.max_relative_position
        rel = self.rel_pos_encoding[rel_idx]
        scores = scores + jnp.einsum("bhqd,qkd->bhqk", q, rel)
        attn = jax.nn.softmax(scores, axis=-1)
        out = jnp.einsum("bhqk,bhkd->bhqd", attn, v)
        out = out.transpose(0, 2, 1, 3).reshape(B, Sq, D)
        out = out @ self.Wo + self.bo
        return out, attn


if __name__ == "__main__":
    TOL = dict(atol=3e-2, rtol=3e-2)  # bf16 MXU operands

    B, S, D, H = 2, 8, 32, 4  # batch, seq, d_model, n_heads (head_dim = 8)
    root = jax.random.PRNGKey(0)
    k_params, kq, kk, kv, k2 = jax.random.split(root, 5)

    module = LongRangeTemporalAttentionPallas(d_model=D, n_heads=H,
                                              max_relative_position=32,
                                              key=k_params)

    query = jax.random.normal(kq, (B, S, D), jnp.float32)
    key_t = jax.random.normal(kk, (B, S, D), jnp.float32)
    value = jax.random.normal(kv, (B, S, D), jnp.float32)

    # cross-attention (distinct q/k/v): separate projection path
    out, attn = module(query, key_t, value)
    out, attn = jax.block_until_ready((out, attn))
    ref_out, ref_attn = module.reference(query, key_t, value)
    assert out.shape == (B, S, D) and attn.shape == (B, H, S, S)
    assert jnp.allclose(out, ref_out, **TOL)
    assert jnp.allclose(attn, ref_attn, **TOL)

    # self-attention: exercises the fused [D, 3D] QKV projection
    out_sa, attn_sa = module(query, query, query)
    jax.block_until_ready((out_sa, attn_sa))
    ref_out_sa, ref_attn_sa = module.reference(query, query, query)
    assert jnp.allclose(out_sa, ref_out_sa, **TOL)
    assert jnp.allclose(attn_sa, ref_attn_sa, **TOL)

    # K is V: exercises the fused [D, 2D] KV projection
    out_kv, attn_kv = module(query, key_t, key_t)
    jax.block_until_ready((out_kv, attn_kv))
    ref_out_kv, ref_attn_kv = module.reference(query, key_t, key_t)
    assert jnp.allclose(out_kv, ref_out_kv, **TOL)
    assert jnp.allclose(attn_kv, ref_attn_kv, **TOL)

    # no-attention-weights fast path (skips the quadratic HBM writeback)
    out_na, attn_na = module(query, key_t, value, return_attention=False)
    jax.block_until_ready(out_na)
    assert attn_na is None
    assert jnp.allclose(out_na, ref_out, **TOL)

    # multi-q-tile path: exercises the in-kernel skew across tiles, clipping
    # of relative positions (R < S) and K/V residency across the q loop.
    S2 = 16
    module2 = LongRangeTemporalAttentionPallas(d_model=D, n_heads=H,
                                               max_relative_position=4,
                                               key=k2)
    q2 = jax.random.normal(jax.random.fold_in(k2, 1), (B, S2, D), jnp.float32)
    k2_t = jax.random.normal(jax.random.fold_in(k2, 2), (B, S2, D), jnp.float32)
    v2 = jax.random.normal(jax.random.fold_in(k2, 3), (B, S2, D), jnp.float32)
    out2, attn2 = module2(q2, k2_t, v2, q_tile=8)
    jax.block_until_ready((out2, attn2))
    ref_out2, ref_attn2 = module2.reference(q2, k2_t, v2)
    assert jnp.allclose(out2, ref_out2, **TOL)
    assert jnp.allclose(attn2, ref_attn2, **TOL)

    print("KERNEL_OK")
</pallas_src>

<mosaic_0001>
module attributes {stable_mosaic.version = 11 : i64} {
  func.func @_probe(%arg0: memref<8x256xf32, #tpu.memory_space<vmem>>, %arg1: memref<8x256xf32, #tpu.memory_space<vmem>>) attributes {dimension_semantics = [], scalar_prefetch = 0 : i64, scratch_operands = 0 : i64, tpu.core_type = #tpu.core_type<tc>} {
    %c0 = arith.constant 0 : index
    %c0_0 = arith.constant 0 : index
    %0 = vector.load %arg0[%c0, %c0_0] : memref<8x256xf32, #tpu.memory_space<vmem>>, vector<8x256xf32>
    %c248_i32 = arith.constant 248 : i32
    %1 = tpu.dynamic_rotate %0 by %c248_i32 dim 1 {stride = 1 : si32, stride_dimension = 0 : si32} : vector<8x256xf32>, i32 -> vector<8x256xf32>
    %c0_1 = arith.constant 0 : index
    %c0_2 = arith.constant 0 : index
    %2 = vector.load %arg1[%c0_1, %c0_2] : memref<8x256xf32, #tpu.memory_space<vmem>>, vector<8x256xf32>
    tpu.vector_store %arg1[%c0_1, %c0_2], %1 {strides = array<i32>} : memref<8x256xf32, #tpu.memory_space<vmem>>, vector<8x256xf32>,
    return
  }
}

module attributes {stable_mosaic.version = 11 : i64} {
  func.func @_linear_kernel(%arg0: i32, %arg1: i32, %arg2: i32, %arg3: memref<16x32xf32, #tpu.memory_space<vmem>>, %arg4: memref<32x32xbf16, #tpu.memory_space<vmem>>, %arg5: memref<1x32xf32, #tpu.memory_space<vmem>>, %arg6: memref<16x32xf32, #tpu.memory_space<vmem>>, %arg7: memref<16x32xf32, #tpu.memory_space<vmem>>) attributes {dimension_semantics = [#tpu.dimension_semantics<parallel>, #tpu.dimension_semantics<parallel>, #tpu.dimension_semantics<arbitrary>], iteration_bounds = array<i64: 1, 1, 1>, scalar_prefetch = 0 : i64, scratch_operands = 1 : i64, tpu.core_type = #tpu.core_type<tc>, window_params = [{transform_indices = @transform_0, window_bounds = array<i64: 16, 32>}, {transform_indices = @transform_1, window_bounds = array<i64: 32, 32>}, {transform_indices = @transform_2, window_bounds = array<i64: 1, 32>}, {transform_indices = @transform_3, window_bounds = array<i64: 16, 32>}]} {
    %c0_i32 = arith.constant 0 : i32
    %0 = arith.cmpi eq, %arg2, %c0_i32 : i32
    %1 = arith.extui %0 : i1 to i32
    %c0_i32_0 = arith.constant 0 : i32
    %2 = arith.cmpi ne, %1, %c0_i32_0 : i32
    scf.if %2 {
      %cst_10 = arith.constant 0.000000e+00 : f32
      %13 = vector.broadcast %cst_10 : f32 to vector<16x32xf32>
      %c0_11 = arith.constant 0 : index
      %c0_12 = arith.constant 0 : index
      %14 = vector.load %arg7[%c0_11, %c0_12] : memref<16x32xf32, #tpu.memory_space<vmem>>, vector<16x32xf32>
      tpu.vector_store %arg7[%c0_11, %c0_12], %13 {strides = array<i32>} : memref<16x32xf32, #tpu.memory_space<vmem>>, vector<16x32xf32>,
    } else {
    }
    %c0 = arith.constant 0 : index
    %c0_1 = arith.constant 0 : index
    %3 = vector.load %arg7[%c0, %c0_1] : memref<16x32xf32, #tpu.memory_space<vmem>>, vector<16x32xf32>
    %c0_2 = arith.constant 0 : index
    %c0_3 = arith.constant 0 : index
    %4 = vector.load %arg3[%c0_2, %c0_3] : memref<16x32xf32, #tpu.memory_space<vmem>>, vector<16x32xf32>
    %5 = arith.truncf %4 : vector<16x32xf32> to vector<16x32xbf16>
    %c0_4 = arith.constant 0 : index
    %c0_5 = arith.constant 0 : index
    %6 = vector.load %arg4[%c0_4, %c0_5] : memref<32x32xbf16, #tpu.memory_space<vmem>>, vector<32x32xbf16>
    %cst = arith.constant dense<0.000000e+00> : vector<16x32xf32>
    %7 = tpu.matmul %5, %6, %cst {dimension_numbers = #tpu.dot_dimension_numbers<[1], [0], [0], [1], [0, 0, 1, 1], [], []>} : vector<16x32xbf16>, vector<32x32xbf16>, vector<16x32xf32> -> vector<16x32xf32>
    %8 = arith.addf %3, %7 : vector<16x32xf32>
    %c0_6 = arith.constant 0 : index
    %c0_7 = arith.constant 0 : index
    %9 = vector.load %arg7[%c0_6, %c0_7] : memref<16x32xf32, #tpu.memory_space<vmem>>, vector<16x32xf32>
    tpu.vector_store %arg7[%c0_6, %c0_7], %8 {strides = array<i32>} : memref<16x32xf32, #tpu.memory_space<vmem>>, vector<16x32xf32>,
    %c0_i32_8 = arith.constant 0 : i32
    %10 = arith.cmpi eq, %arg2, %c0_i32_8 : i32
    %11 = arith.extui %10 : i1 to i32
    %c0_i32_9 = arith.constant 0 : i32
    %12 = arith.cmpi ne, %11, %c0_i32_9 : i32
    scf.if %12 {
      %c0_10 = arith.constant 0 : index
      %c0_11 = arith.constant 0 : index
      %13 = vector.load %arg7[%c0_10, %c0_11] : memref<16x32xf32, #tpu.memory_space<vmem>>, vector<16x32xf32>
      %c0_12 = arith.constant 0 : index
      %c0_13 = arith.constant 0 : index
      %14 = vector.load %arg5[%c0_12, %c0_13] : memref<1x32xf32, #tpu.memory_space<vmem>>, vector<1x32xf32>
      %15 = vector.broadcast %14 : vector<1x32xf32> to vector<16x32xf32>
      %16 = arith.addf %13, %15 : vector<16x32xf32>
      %c0_14 = arith.constant 0 : index
      %c0_15 = arith.constant 0 : index
      %17 = vector.load %arg6[%c0_14, %c0_15] : memref<16x32xf32, #tpu.memory_space<vmem>>, vector<16x32xf32>
      tpu.vector_store %arg6[%c0_14, %c0_15], %16 {strides = array<i32>} : memref<16x32xf32, #tpu.memory_space<vmem>>, vector<16x32xf32>,
    } else {
    }
    return
  }
  func.func @transform_0(%arg0: i32, %arg1: i32, %arg2: i32) -> (i32, i32) {
    %c0_i32 = arith.constant 0 : i32
    return %arg0, %arg2 : i32, i32
  }
  func.func @transform_1(%arg0: i32, %arg1: i32, %arg2: i32) -> (i32, i32) {
    %c0_i32 = arith.constant 0 : i32
    return %arg2, %arg1 : i32, i32
  }
  func.func @transform_2(%arg0: i32, %arg1: i32, %arg2: i32) -> (i32, i32) {
    %c0_i32 = arith.constant 0 : i32
    %c0_i32_0 = arith.constant 0 : i32
    return %c0_i32, %arg1 : i32, i32
  }
  func.func @transform_3(%arg0: i32, %arg1: i32, %arg2: i32) -> (i32, i32) {
    %c0_i32 = arith.constant 0 : i32
    return %arg0, %arg1 : i32, i32
  }
}

</mosaic_0001>

<bundles_post_ra>
// kernel: tpu_custom_call.1
= control target key start
LH: loop header
LB: loop body
LE: loop exit
PB: predicated region body
PF: predicated region fallthrough
CT: control target
= control target key end

     0   :  { %6 = vsyncpa [#allocation3], 0  ;;  %s122_s0 = inlined_call_operand.hbm [shape: f32[8,256], index: 0, kind: input, shape index: {}]   ;;  %s123_s1 = inlined_call_operand.hbm [shape: f32[8,256], index: 1, kind: output, shape index: {}]  }
   0x1   :  { %7 = vsyncpa [#allocation4], 0  ;;  %s103_s6 = smov [#allocation2]  }
   0x2   :  { %s14_s7 = sshll.u32 %s103_s6, 4  ;;  %s15_s7 = int_to_ptr.vmem [resolvable:$true] %s14_s7 }
   0x3   :  { %s67_s8 = scalar_lea.vmem %s15_s7, 256  ;;  %p72_p1 = scmp.lt.s32.totalorder %s15_s7, %s15_s7 }
   0x4   :  { %p68_p0 = scmp.ne.s32.totalorder %s15_s7, %s67_s8  ;;  %p73_p2 = scmp.lt.s32.totalorder %s67_s8, %s67_s8 }
   0x6   :  { %p74_p3 = por %p73_p2, %p72_p1 }
   0x8   :  { %p75_p4 = pnand %p74_p3, %p68_p0 }
   0xa   :  { %78 = shalt.err (!%p75_p4)
}
   0xb   :  { %17 = dma.hbm_to_vmem [thread:$0]  %s122_s0, 256, %s15_s7, [#allocation3]  }
   0xc   :  { %99 = dma.done.wait [#allocation3], 256  }
   0xd   :  { %100 = vsyncadd [#allocation3], 4294967040  ;;  %v21_v0 = vld [vmem:[#allocation2] sm:$0xff]  ;;  %s104_s11 = smov 376   ;;  %v22_v1 = vld [vmem:[#allocation2 + $0x8] sm:$0xff]  ;;  %v31_v2 = vlaneseq  ;;  %s105_s12 = smov [#allocation5]  }
   0xe   :  { %25 = vrot.lane.b32.xlu0 %v21_v0, %s104_s11  ;;  %s47_s13 = sshll.u32 %s105_s12, 4  ;;  %s48_s13 = int_to_ptr.vmem [resolvable:$true] %s47_s13 }
   0xf   :  { %v32_v3 = vshrl.u32 %v31_v2, 7  ;;  %v35_v5 = vand.u32 127, %v31_v2  ;;  %s79_s0 = scalar_lea.vmem %s48_s13, 256  ;;  %p84_p6 = scmp.lt.s32.totalorder %s48_s13, %s48_s13 }
  0x10   :  { %p80_p5 = scmp.ne.s32.totalorder %s48_s13, %s79_s0  ;;  %p85_p7 = scmp.lt.s32.totalorder %s79_s0, %s79_s0 }
  0x11   :  { %v33_v4 = vadd.s32 120, %v32_v3 }
  0x12   :  { %29 = vrot.lane.b32.xlu0 %v22_v1, %s104_s11  ;;  %p86_p8 = por %p85_p7, %p84_p6 }
  0x13   :  { %vm36_vm0 = vcmp.lt.s32.totalorder %v35_v5, %v33_v4 }
  0x14   :  { %p87_p9 = pnand %p86_p8, %p80_p5 }
  0x80   :  { %v26_v6 = vpop.permute.xlu0 %25 }
  0x84   :  { %v30_v7 = vpop.permute.xlu0 %29 }
  0x85   :  { %v37_v8 = vsel %vm36_vm0, %v26_v6, %v30_v7  ;;  %v38_v9 = vsel %vm36_vm0, %v30_v7, %v26_v6 }
  0x86   :  { %39 = vst [vmem:[#allocation5] sm:$0xff] %v37_v8  ;;  %40 = vst [vmem:[#allocation5 + $0x8] sm:$0xff] %v38_v9 }
  0x87   :  { %90 = shalt.err (!%p87_p9)
}
  0x88   :  { %50 = dma.vmem_to_hbm [thread:$0]  %s48_s13, 256, %s123_s1, [#allocation4]  }
  0x89   :  { %101 = dma.done.wait [#allocation4], 256  }
  0x8a   :  { %102 = vsyncadd [#allocation4], 4294967040 }
  0x8b   :  { %54 = vsyncpa [#allocation3], 1 }
  0x8c   :  { %55 = vsyncpa [#allocation4], 1 }

// kernel: tpu_custom_call.1
= control target key start
LH: loop header
LB: loop body
LE: loop exit
PB: predicated region body
PF: predicated region fallthrough
CT: control target
= control target key end

     0   :  { %8 = vsyncpa [#allocation4], 0  ;;  %s301_s0 = inlined_call_operand.hbm [shape: f32[16,32], index: 0, kind: input, shape index: {}]   ;;  %s302_s1 = inlined_call_operand.hbm [shape: bf16[32,32], index: 1, kind: input, shape index: {}]   ;;  %s303_s2 = inlined_call_operand.vmem [shape: f32[1,32], index: 2, kind: input, shape index: {}]   ;;  %s304_s3 = inlined_call_operand.hbm [shape: f32[16,32], index: 3, kind: output, shape index: {}]  }
   0x1   :  { %9 = vsyncpa [#allocation7], 0 }
   0x2   :  { %10 = vsyncpa [#allocation5], 0  ;;  %s247_s12 = smov [#allocation3]  }
   0x3   :  { %s16_s13 = sshll.u32 %s247_s12, 4  ;;  %s17_s13 = int_to_ptr.vmem [resolvable:$true] %s16_s13 }
   0x4   :  { %s189_s14 = scalar_lea.vmem %s17_s13, 256  ;;  %p194_p1 = scmp.lt.s32.totalorder %s17_s13, %s17_s13 }
   0x5   :  { %p190_p0 = scmp.ne.s32.totalorder %s17_s13, %s189_s14  ;;  %p195_p2 = scmp.lt.s32.totalorder %s189_s14, %s189_s14 }
   0x7   :  { %p196_p3 = por %p195_p2, %p194_p1 }
   0x9   :  { %p197_p4 = pnand %p196_p3, %p190_p0 }
   0xb   :  { %200 = shalt.err (!%p197_p4)
}
   0xc   :  { %s248_s15 = smov 128   ;;  %s249_s16 = smov 8  }
   0xd   :  { %22 = dma.hbm_to_vmem [thread:$0]  %s301_s0, 256, %s17_s13, [#allocation4], %s248_s15, %s248_s15, %s249_s16  }
   0xe   :  { %s250_s19 = smov [#allocation6]  }
   0xf   :  { %s28_s20 = sshll.u32 %s250_s19, 4  ;;  %s29_s20 = int_to_ptr.vmem [resolvable:$true] %s28_s20 }
  0x10   :  { %s209_s21 = scalar_lea.vmem %s29_s20, 256  ;;  %p214_p6 = scmp.lt.s32.totalorder %s29_s20, %s29_s20 }
  0x11   :  { %p210_p5 = scmp.ne.s32.totalorder %s29_s20, %s209_s21  ;;  %p215_p7 = scmp.lt.s32.totalorder %s209_s21, %s209_s21 }
  0x13   :  { %p216_p8 = por %p215_p7, %p214_p6 }
  0x15   :  { %p217_p9 = pnand %p216_p8, %p210_p5 }
  0x17   :  { %220 = shalt.err (!%p217_p9)
}
  0x18   :  { %s251_s22 = smov 64   ;;  %s252_s23 = smov 4  }
  0x19   :  { %34 = dma.hbm_to_vmem [thread:$0]  %s302_s1, 256, %s29_s20, [#allocation7], %s251_s22, %s251_s22, %s252_s23  }
  0x1a   :  { %241 = dma.done.wait [#allocation4], 256  }
  0x1b   :  { %242 = vsyncadd [#allocation4], 4294967040 }
  0x1c   :  { %243 = dma.done.wait [#allocation7], 256  }
  0x1d   :  { %244 = vsyncadd [#allocation7], 4294967040  ;;  %vm48_vm0 = vcmask 261120   ;;  %v253_v0 = vmov 0.0   ;;  %vm254_vm1 = vmmov 0   ;;  %v179_v1 = vld [vmem:[#allocation6 + $0x8] sm:$0xff]  }
  0x1e   :  { %162 = vmatprep.subr.bf16.mxu0 %v253_v0  ;;  %166 = vmatprep.mubr.msk.bf16.mxu0 %vm254_vm1, %v253_v0  ;;  %49 = vst.msk [vmem:[#allocation2] sm:$0xff] %vm48_vm0, %v253_v0  ;;  %50 = vst.msk [vmem:[#allocation2 + $0x8] sm:$0xff] %vm48_vm0, %v253_v0  ;;  %v180_v2 = vld [vmem:[#allocation6] sm:$0xff]   ;;  %v53_v3 = vld [vmem:[#allocation3] sm:$0xff]  ;;  %s255_s26 = smov [#allocation8]  }
  0x1f   :  { %163 = vmatpush3.bf16.msra.mxu0 %v179_v1  ;;  %v54_v4 = vld [vmem:[#allocation3 + $0x8] sm:$0xff]  ;;  %v158_v14 = vld [vmem:[%s303_s2] ss:$0 sm:$0xff]  ;;  %s142_s27 = sshll.u32 %s255_s26, 4  ;;  %s143_s27 = int_to_ptr.vmem [resolvable:$true] %s142_s27 }
  0x20   :  { %164 = vmatprep.subr.bf16.mxu0 %v253_v0  ;;  %v55_v5 = vpack.c.bf16 %v54_v4, %v53_v3  ;;  %s221_s28 = scalar_lea.vmem %s143_s27, 256  ;;  %p226_p11 = scmp.lt.s32.totalorder %s143_s27, %s143_s27 }
  0x21   :  { %p222_p10 = scmp.ne.s32.totalorder %s143_s27, %s221_s28  ;;  %p227_p12 = scmp.lt.s32.totalorder %s221_s28, %s221_s28 }
  0x23   :  { %165 = vmatpush3.bf16.msra.mxu0 %v180_v2  ;;  %p228_p13 = por %p227_p12, %p226_p11 }
  0x25   :  { %v51_v6 = vld [vmem:[#allocation2] sm:$0xff]  ;;  %v52_v10 = vld [vmem:[#allocation2 + $0x8] sm:$0xff]  ;;  %p229_p0 = pnand %p228_p13, %p222_p10 }
  0x26   :  { %167 = vmatmul.mubr.msk.bf16.vlgmr.msra.gmra.mxu0 %vm48_vm0, %v55_v5 }
  0xe6   :  { %v110_v7 = vpop.f32.mrf.mxu0 }
  0xe7   :  { %v117_v8 = vadd.f32 %v110_v7, %v51_v6 }
  0xe8   :  { %v168_v9 = vpop.f32.mrf.mxu0 }
  0xe9   :  { %119 = vst.msk [vmem:[#allocation2] sm:$0xff] %vm48_vm0, %v117_v8 }
  0xea   :  { %v113_v11 = vpop.f32.mrf.mxu0 }
  0xeb   :  { %v118_v12 = vadd.f32 %v113_v11, %v52_v10 }
  0xec   :  { %v169_v13 = vpop.f32.mrf.mxu0 }
  0xed   :  { %120 = vst.msk [vmem:[#allocation2 + $0x8] sm:$0xff] %vm48_vm0, %v118_v12 }
  0xf0   :  { %v124_v15 = vld [vmem:[#allocation2] sm:$0xff] }
  0xf1   :  { %v133_v16 = vadd.f32 %v158_v14, %v124_v15 }
  0xf3   :  { %135 = vst.msk [vmem:[#allocation8] sm:$0xff] %vm48_vm0, %v133_v16 }
  0xf4   :  { %v125_v17 = vld [vmem:[#allocation2 + $0x8] sm:$0xff] }
  0xf5   :  { %v134_v18 = vadd.f32 %v158_v14, %v125_v17 }
  0xf7   :  { %136 = vst.msk [vmem:[#allocation8 + $0x8] sm:$0xff] %vm48_vm0, %v134_v18 }
  0xf8   :  { %232 = shalt.err (!%p229_p0)
}
  0xf9   :  { %148 = dma.vmem_to_hbm [thread:$0]  %s143_s27, 256, %s304_s3, [#allocation5], %s248_s15, %s248_s15, %s249_s16  }
  0xfa   :  { %245 = dma.done.wait [#allocation5], 256  }
  0xfb   :  { %246 = vsyncadd [#allocation5], 4294967040 }
  0xfc   :  { %152 = vsyncpa [#allocation4], 1 }
  0xfd   :  { %153 = vsyncpa [#allocation7], 1 }
  0xfe   :  { %154 = vsyncpa [#allocation5], 1 }

</bundles_post_ra>
